<compile_context>
chip_gen: v5e
topology: v5e:2x2
jax: 0.10.0
libtpu: 0.0.40
codegen_flags: <defaults>
</compile_context>

<pallas_src>
import functools

import jax
import jax.numpy as jnp
from jax.experimental import pallas as pl
from jax.experimental.pallas import tpu as pltpu


def _round_up(x, m):
    return ((x + m - 1) // m) * m


def _padded_block_bytes(blocks):
    """VMEM bytes for (shape, dtype) blocks, rounded to native (8*packing, 128) tiles."""
    total = 0
    for shape, dtype in blocks:
        itemsize = jnp.dtype(dtype).itemsize
        packing = max(1, 4 // itemsize)          # sub-32-bit dtypes pack along sublanes
        rows = shape[-2] if len(shape) >= 2 else 1
        cols = shape[-1]
        lead = 1
        for d in shape[:-2]:
            lead *= d
        total += lead * _round_up(rows, 8 * packing) * _round_up(cols, 128) * itemsize
    return total


def _vmem_budget_bytes():
    """Per-generation scoped-VMEM budget (~75% of physical per-core VMEM)."""
    cap = 64 * 1024 * 1024                       # conservative default: v7x physical VMEM
    try:
        cap = int(pltpu.get_tpu_info().vmem_capacity_bytes)
    except Exception:
        pass
    return max(16 * 1024 * 1024, (cap * 3) // 4)


def _decoder_kernel(x_ref, w1_ref, b1_ref, w2_ref, b2_ref, o_ref, h_ref, acc_ref):
    # grid = (i: M tile [parallel], j: N tile [arbitrary], k: hidden chunk [arbitrary])
    # x_ref : (TM, P)      bf16   resident across j, k
    # w1_ref: (P, TK)      bf16   hidden chunk
    # b1_ref: (1, TK)      f32    hidden chunk
    # w2_ref: (TK, TN)     bf16   streamed (k fastest -> single HBM pass per M tile)
    # b2_ref: (1, TN)      f32    per N tile
    # o_ref : (TM, TN)     out dtype
    # h_ref : (GK, TM, TK) bf16   cached sigmoid activations (scratch)
    # acc_ref:(TM, TN)     f32    output accumulator (scratch)
    j = pl.program_id(1)
    k = pl.program_id(2)

    # First matmul + sigmoid: exactly once per (i, k) -- only on the first N tile.
    # f32 accumulation / bias / sigmoid (VPU + EUP); cached as a bf16 MXU operand.
    @pl.when(j == 0)
    def _():
        h = jnp.dot(x_ref[...], w1_ref[...], preferred_element_type=jnp.float32)
        h = jax.nn.sigmoid(h + b1_ref[...])
        h_ref[k] = h.astype(h_ref.dtype)

    # Second matmul: this hidden chunk's contribution to the (i, j) output tile.
    part = jnp.dot(h_ref[k], w2_ref[...], preferred_element_type=jnp.float32)

    @pl.when(k == 0)
    def _():
        acc_ref[...] = part

    @pl.when(k > 0)
    def _():
        acc_ref[...] += part

    # Epilogue once per output tile: bias add, cast, lane-dense store.
    @pl.when(k == pl.num_programs(2) - 1)
    def _():
        o_ref[...] = (acc_ref[...] + b2_ref[...]).astype(o_ref.dtype)


def decoder_forward(x, params, image_size, *, compute_dtype=jnp.bfloat16,
                    out_dtype=jnp.float32):
    """x: (B, C, num_patches) -> (1, B*C, H, W), matching PyTorch Decoder.forward."""
    w1, b1, w2, b2 = params
    H, W = int(image_size[2]), int(image_size[3])
    B, C, P = x.shape
    M = B * C
    pixel_num = H * W
    hidden = pixel_num // 4
    assert w1.shape == (P, hidden) and w2.shape == (hidden, pixel_num)

    # dtype plan: bf16 MXU operands; f32 accumulation / biases / sigmoid.
    x2d = x.reshape(M, P).astype(compute_dtype)
    w1c = w1.astype(compute_dtype)
    w2c = w2.astype(compute_dtype)
    b1f = b1.reshape(1, hidden).astype(jnp.float32)
    b2f = b2.reshape(1, pixel_num).astype(jnp.float32)

    # ---- M tiling: single resident M tile for M <= 512 => W2 is single-pass.
    m_pad = _round_up(M, 8)
    if m_pad <= 512:
        tile_m = m_pad
    else:
        tile_m = 256
        m_pad = _round_up(M, tile_m)
        # TODO(synk): for M > 512 (grid_m > 1) W2 is re-streamed once per M tile;
        # if that regime matters, switch to a W2-resident / M-streamed schedule.
    if m_pad != M:
        x2d = jnp.pad(x2d, ((0, m_pad - M), (0, 0)))

    # ---- N padding: lane-dense (multiple-of-128) output tiles, never masked stores.
    n_pad = _round_up(pixel_num, 128)
    if n_pad != pixel_num:
        w2c = jnp.pad(w2c, ((0, 0), (0, n_pad - pixel_num)))
        b2f = jnp.pad(b2f, ((0, 0), (0, n_pad - pixel_num)))

    # ---- K (hidden) chunking: bounds the streamed-W2 / cached-h footprint.
    tile_k = hidden
    if hidden > 2048:
        for c in (2048, 1024, 512, 256, 128):
            if hidden % c == 0:
                tile_k = c
                break
    grid_k = hidden // tile_k

    # ---- Pick the largest lane-dense tile_n whose footprint fits the VMEM budget.
    budget = _vmem_budget_bytes()

    def footprint(tn):
        streamed = [
            ((tile_m, P), compute_dtype),       # x tile
            ((P, tile_k), compute_dtype),       # W1 hidden chunk
            ((1, tile_k), jnp.float32),         # b1 hidden chunk
            ((tile_k, tn), compute_dtype),      # W2 chunk
            ((1, tn), jnp.float32),             # b2 N tile
            ((tile_m, tn), out_dtype),          # output tile
        ]
        scratch = [
            ((grid_k, tile_m, tile_k), compute_dtype),   # cached sigmoid(h)
            ((tile_m, tn), jnp.float32),                 # f32 accumulator
        ]
        # x2: default double-buffered pipeline on the streamed blocks.
        return 2 * _padded_block_bytes(streamed) + _padded_block_bytes(scratch)

    tile_n = 128
    for c in (1024, 512, 256, 128):
        if n_pad % c == 0 and footprint(c) + (2 << 20) <= budget:
            tile_n = c
            break

    # Derived from the real tile footprint; never capped below the requirement.
    vmem_bytes = max(4 * 1024 * 1024, footprint(tile_n) + (2 << 20))

    grid = (m_pad // tile_m, n_pad // tile_n, grid_k)

    in_specs = [
        pl.BlockSpec((tile_m, P), lambda i, j, k: (i, 0)),         # x (per-M, resident)
        pl.BlockSpec((P, tile_k), lambda i, j, k: (0, k)),         # W1 hidden chunk (tiny)
        pl.BlockSpec((1, tile_k), lambda i, j, k: (0, k)),         # b1 hidden chunk
        pl.BlockSpec((tile_k, tile_n), lambda i, j, k: (k, j)),    # W2 chunk stream
        pl.BlockSpec((1, tile_n), lambda i, j, k: (0, j)),         # b2 N tile
    ]
    out_specs = pl.BlockSpec((tile_m, tile_n), lambda i, j, k: (i, j))

    scratch_shapes = [
        pltpu.VMEM((grid_k, tile_m, tile_k), compute_dtype),       # cached sigmoid(h)
        pltpu.VMEM((tile_m, tile_n), jnp.float32),                 # f32 accumulator
    ]

    cost = pl.CostEstimate(
        flops=2 * M * (P * hidden + hidden * pixel_num),
        transcendentals=M * hidden,
        bytes_accessed=int(
            M * P * jnp.dtype(compute_dtype).itemsize
            + P * hidden * jnp.dtype(compute_dtype).itemsize
            + hidden * 4
            + hidden * pixel_num * jnp.dtype(compute_dtype).itemsize
            + pixel_num * 4
            + M * pixel_num * jnp.dtype(out_dtype).itemsize),
    )

    out2d = pl.pallas_call(
        _decoder_kernel,
        out_shape=jax.ShapeDtypeStruct((m_pad, n_pad), out_dtype),
        grid=grid,
        in_specs=in_specs,
        out_specs=out_specs,
        scratch_shapes=scratch_shapes,
        compiler_params=pltpu.CompilerParams(
            # i: megacore-parallel; j must stay sequential (h cache); k: reduction.
            dimension_semantics=("parallel", "arbitrary", "arbitrary"),
            vmem_limit_bytes=int(vmem_bytes),
        ),
        cost_estimate=cost,
    )(x2d, w1c, b1f, w2c, b2f)

    out2d = out2d[:M, :pixel_num]
    # PyTorch: .squeeze().reshape(-1, H, W).unsqueeze(0)
    return out2d.reshape(-1, H, W)[None, ...]


def init_decoder_params(key, num_patches, pixel_num, dtype=jnp.float32):
    hidden = pixel_num // 4
    k1, k2, k3, k4 = jax.random.split(key, 4)
    # Deterministic synthetic init (PyTorch-Linear-like uniform bounds).
    bound1 = 1.0 / (num_patches ** 0.5)
    bound2 = 1.0 / (hidden ** 0.5)
    w1 = jax.random.uniform(k1, (num_patches, hidden), dtype, -bound1, bound1)
    b1 = jax.random.uniform(k2, (1, hidden), dtype, -bound1, bound1)
    w2 = jax.random.uniform(k3, (hidden, pixel_num), dtype, -bound2, bound2)
    b2 = jax.random.uniform(k4, (1, pixel_num), dtype, -bound2, bound2)
    return w1, b1, w2, b2


if __name__ == "__main__":
    # Module-consistent small shapes:
    #   input_size = (N, C, H, W) = (2, 4, 16, 16) -> pixel_num = 256, hidden = 64
    #   num_patches = 8; x: (2, 4, 8) -> M = B*C = 8 (one full sublane tile)
    image_size = (2, 4, 16, 16)
    num_patches = 8
    pixel_num = image_size[2] * image_size[3]

    key = jax.random.PRNGKey(0)
    kx, kp = jax.random.split(key)
    x = jax.random.normal(kx, (image_size[0], image_size[1], num_patches),
                          dtype=jnp.float32)
    params = init_decoder_params(kp, num_patches, pixel_num)

    fwd = jax.jit(functools.partial(decoder_forward, image_size=image_size))
    out = jax.block_until_ready(fwd(x, params))

    # Reference: plain-JAX math with the same bf16-operand / f32-accumulate plan.
    w1, b1, w2, b2 = params
    cd = jnp.bfloat16
    x2 = x.reshape(-1, num_patches).astype(cd).astype(jnp.float32)
    w1c = w1.astype(cd).astype(jnp.float32)
    w2c = w2.astype(cd).astype(jnp.float32)
    h_ref = jax.nn.sigmoid(x2 @ w1c + b1)
    y_ref = h_ref.astype(cd).astype(jnp.float32) @ w2c + b2
    ref = y_ref.reshape(-1, image_size[2], image_size[3])[None, ...]

    assert out.shape == (1, image_size[0] * image_size[1],
                         image_size[2], image_size[3]), out.shape
    assert out.dtype == jnp.float32
    assert jnp.allclose(out, ref, atol=5e-3, rtol=5e-3), float(
        jnp.max(jnp.abs(out - ref)))

    print("KERNEL_OK")
</pallas_src>

<mosaic_0001>
module attributes {stable_mosaic.version = 11 : i64} {
  func.func @_decoder_kernel(%arg0: i32, %arg1: i32, %arg2: i32, %arg3: memref<8x8xbf16, #tpu.memory_space<vmem>>, %arg4: memref<8x64xbf16, #tpu.memory_space<vmem>>, %arg5: memref<1x64xf32, #tpu.memory_space<vmem>>, %arg6: memref<64x256xbf16, #tpu.memory_space<vmem>>, %arg7: memref<1x256xf32, #tpu.memory_space<vmem>>, %arg8: memref<8x256xf32, #tpu.memory_space<vmem>>, %arg9: memref<1x8x64xbf16, #tpu.memory_space<vmem>>, %arg10: memref<8x256xf32, #tpu.memory_space<vmem>>) attributes {dimension_semantics = [#tpu.dimension_semantics<parallel>, #tpu.dimension_semantics<arbitrary>, #tpu.dimension_semantics<arbitrary>], iteration_bounds = array<i64: 1, 1, 1>, scalar_prefetch = 0 : i64, scratch_operands = 2 : i64, tpu.core_type = #tpu.core_type<tc>, window_params = [{transform_indices = @transform_0, window_bounds = array<i64: 8, 8>}, {transform_indices = @transform_1, window_bounds = array<i64: 8, 64>}, {transform_indices = @transform_2, window_bounds = array<i64: 1, 64>}, {transform_indices = @transform_3, window_bounds = array<i64: 64, 256>}, {transform_indices = @transform_4, window_bounds = array<i64: 1, 256>}, {transform_indices = @transform_5, window_bounds = array<i64: 8, 256>}]} {
    %c0_i32 = arith.constant 0 : i32
    %0 = arith.cmpi eq, %arg1, %c0_i32 : i32
    %1 = arith.extui %0 : i1 to i32
    %c0_i32_0 = arith.constant 0 : i32
    %2 = arith.cmpi ne, %1, %c0_i32_0 : i32
    scf.if %2 {
      %c0_10 = arith.constant 0 : index
      %c0_11 = arith.constant 0 : index
      %17 = vector.load %arg3[%c0_10, %c0_11] : memref<8x8xbf16, #tpu.memory_space<vmem>>, vector<8x8xbf16>
      %c0_12 = arith.constant 0 : index
      %c0_13 = arith.constant 0 : index
      %18 = vector.load %arg4[%c0_12, %c0_13] : memref<8x64xbf16, #tpu.memory_space<vmem>>, vector<8x64xbf16>
      %cst_14 = arith.constant dense<0.000000e+00> : vector<8x64xf32>
      %19 = tpu.matmul %17, %18, %cst_14 {dimension_numbers = #tpu.dot_dimension_numbers<[1], [0], [0], [1], [0, 0, 1, 1], [], []>} : vector<8x8xbf16>, vector<8x64xbf16>, vector<8x64xf32> -> vector<8x64xf32>
      %c0_15 = arith.constant 0 : index
      %c0_16 = arith.constant 0 : index
      %20 = vector.load %arg5[%c0_15, %c0_16] : memref<1x64xf32, #tpu.memory_space<vmem>>, vector<1x64xf32>
      %21 = vector.broadcast %20 : vector<1x64xf32> to vector<8x64xf32>
      %22 = arith.addf %19, %21 : vector<8x64xf32>
      %23 = arith.negf %22 : vector<8x64xf32>
      %24 = math.exp %23 : vector<8x64xf32>
      %cst_17 = arith.constant 1.000000e+00 : f32
      %25 = vector.broadcast %cst_17 : f32 to vector<8x64xf32>
      %26 = arith.addf %25, %24 : vector<8x64xf32>
      %27 = arith.divf %25, %26 : vector<8x64xf32>
      %28 = arith.truncf %27 : vector<8x64xf32> to vector<8x64xbf16>
      %29 = arith.index_cast %arg2 : i32 to index
      %c0_18 = arith.constant 0 : index
      %c0_19 = arith.constant 0 : index
      %30 = vector.load %arg9[%29, %c0_18, %c0_19] : memref<1x8x64xbf16, #tpu.memory_space<vmem>>, vector<1x8x64xbf16>
      %31 = vector.shape_cast %30 : vector<1x8x64xbf16> to vector<8x64xbf16>
      %32 = vector.shape_cast %28 : vector<8x64xbf16> to vector<1x8x64xbf16>
      tpu.vector_store %arg9[%29, %c0_18, %c0_19], %32 {strides = array<i32>} : memref<1x8x64xbf16, #tpu.memory_space<vmem>>, vector<1x8x64xbf16>,
    } else {
    }
    %3 = arith.index_cast %arg2 : i32 to index
    %c0 = arith.constant 0 : index
    %c0_1 = arith.constant 0 : index
    %4 = vector.load %arg9[%3, %c0, %c0_1] : memref<1x8x64xbf16, #tpu.memory_space<vmem>>, vector<1x8x64xbf16>
    %5 = vector.shape_cast %4 : vector<1x8x64xbf16> to vector<8x64xbf16>
    %c0_2 = arith.constant 0 : index
    %c0_3 = arith.constant 0 : index
    %6 = vector.load %arg6[%c0_2, %c0_3] : memref<64x256xbf16, #tpu.memory_space<vmem>>, vector<64x256xbf16>
    %cst = arith.constant dense<0.000000e+00> : vector<8x256xf32>
    %7 = tpu.matmul %5, %6, %cst {dimension_numbers = #tpu.dot_dimension_numbers<[1], [0], [0], [1], [0, 0, 1, 1], [], []>} : vector<8x64xbf16>, vector<64x256xbf16>, vector<8x256xf32> -> vector<8x256xf32>
    %c0_i32_4 = arith.constant 0 : i32
    %8 = arith.cmpi eq, %arg2, %c0_i32_4 : i32
    %9 = arith.extui %8 : i1 to i32
    %c0_i32_5 = arith.constant 0 : i32
    %10 = arith.cmpi ne, %9, %c0_i32_5 : i32
    scf.if %10 {
      %c0_10 = arith.constant 0 : index
      %c0_11 = arith.constant 0 : index
      %17 = vector.load %arg10[%c0_10, %c0_11] : memref<8x256xf32, #tpu.memory_space<vmem>>, vector<8x256xf32>
      tpu.vector_store %arg10[%c0_10, %c0_11], %7 {strides = array<i32>} : memref<8x256xf32, #tpu.memory_space<vmem>>, vector<8x256xf32>,
    } else {
    }
    %c0_i32_6 = arith.constant 0 : i32
    %11 = arith.cmpi sgt, %arg2, %c0_i32_6 : i32
    %12 = arith.extui %11 : i1 to i32
    %c0_i32_7 = arith.constant 0 : i32
    %13 = arith.cmpi ne, %12, %c0_i32_7 : i32
    scf.if %13 {
      %c0_10 = arith.constant 0 : index
      %c0_11 = arith.constant 0 : index
      %17 = vector.load %arg10[%c0_10, %c0_11] : memref<8x256xf32, #tpu.memory_space<vmem>>, vector<8x256xf32>
      %18 = arith.addf %17, %7 : vector<8x256xf32>
      %c0_12 = arith.constant 0 : index
      %c0_13 = arith.constant 0 : index
      %19 = vector.load %arg10[%c0_12, %c0_13] : memref<8x256xf32, #tpu.memory_space<vmem>>, vector<8x256xf32>
      tpu.vector_store %arg10[%c0_12, %c0_13], %18 {strides = array<i32>} : memref<8x256xf32, #tpu.memory_space<vmem>>, vector<8x256xf32>,
    } else {
    }
    %c0_i32_8 = arith.constant 0 : i32
    %14 = arith.cmpi eq, %arg2, %c0_i32_8 : i32
    %15 = arith.extui %14 : i1 to i32
    %c0_i32_9 = arith.constant 0 : i32
    %16 = arith.cmpi ne, %15, %c0_i32_9 : i32
    scf.if %16 {
      %c0_10 = arith.constant 0 : index
      %c0_11 = arith.constant 0 : index
      %17 = vector.load %arg10[%c0_10, %c0_11] : memref<8x256xf32, #tpu.memory_space<vmem>>, vector<8x256xf32>
      %c0_12 = arith.constant 0 : index
      %c0_13 = arith.constant 0 : index
      %18 = vector.load %arg7[%c0_12, %c0_13] : memref<1x256xf32, #tpu.memory_space<vmem>>, vector<1x256xf32>
      %19 = vector.broadcast %18 : vector<1x256xf32> to vector<8x256xf32>
      %20 = arith.addf %17, %19 : vector<8x256xf32>
      %c0_14 = arith.constant 0 : index
      %c0_15 = arith.constant 0 : index
      %21 = vector.load %arg8[%c0_14, %c0_15] : memref<8x256xf32, #tpu.memory_space<vmem>>, vector<8x256xf32>
      tpu.vector_store %arg8[%c0_14, %c0_15], %20 {strides = array<i32>} : memref<8x256xf32, #tpu.memory_space<vmem>>, vector<8x256xf32>,
    } else {
    }
    return
  }
  func.func @transform_0(%arg0: i32, %arg1: i32, %arg2: i32) -> (i32, i32) {
    %c0_i32 = arith.constant 0 : i32
    %c0_i32_0 = arith.constant 0 : i32
    return %arg0, %c0_i32 : i32, i32
  }
  func.func @transform_1(%arg0: i32, %arg1: i32, %arg2: i32) -> (i32, i32) {
    %c0_i32 = arith.constant 0 : i32
    %c0_i32_0 = arith.constant 0 : i32
    return %c0_i32, %arg2 : i32, i32
  }
  func.func @transform_2(%arg0: i32, %arg1: i32, %arg2: i32) -> (i32, i32) {
    %c0_i32 = arith.constant 0 : i32
    %c0_i32_0 = arith.constant 0 : i32
    return %c0_i32, %arg2 : i32, i32
  }
  func.func @transform_3(%arg0: i32, %arg1: i32, %arg2: i32) -> (i32, i32) {
    %c0_i32 = arith.constant 0 : i32
    return %arg2, %arg1 : i32, i32
  }
  func.func @transform_4(%arg0: i32, %arg1: i32, %arg2: i32) -> (i32, i32) {
    %c0_i32 = arith.constant 0 : i32
    %c0_i32_0 = arith.constant 0 : i32
    return %c0_i32, %arg1 : i32, i32
  }
  func.func @transform_5(%arg0: i32, %arg1: i32, %arg2: i32) -> (i32, i32) {
    %c0_i32 = arith.constant 0 : i32
    return %arg0, %arg1 : i32, i32
  }
}

</mosaic_0001>

<bundles_post_ra>
// kernel: decoder_forward.1
= control target key start
LH: loop header
LB: loop body
LE: loop exit
PB: predicated region body
PF: predicated region fallthrough
CT: control target
= control target key end

     0   :  { %vm35_vm0 = vcmask 1043456   ;;  %vm31_vm1 = vcmask 64512   ;;  %vm72_vm6 = vcmask 519168   ;;  %vm123_vm7 = vcmask 523264   ;;  %s333_s1 = inlined_call_operand.vmem [shape: bf16[8,64], index: 1, kind: input, shape index: {}]   ;;  %s334_s0 = inlined_call_operand.vmem [shape: bf16[8,8], index: 0, kind: input, shape index: {}]   ;;  %s335_s2 = inlined_call_operand.vmem [shape: f32[1,64], index: 2, kind: input, shape index: {}]   ;;  %s336_s3 = inlined_call_operand.vmem [shape: bf16[64,256], index: 3, kind: input, shape index: {}]   ;;  %s337_s4 = inlined_call_operand.vmem [shape: f32[1,256], index: 4, kind: input, shape index: {}]   ;;  %s338_s5 = inlined_call_operand.vmem [shape: f32[8,256], index: 5, kind: output, shape index: {}]  }
   0x1   :  { %v26_v0 = vld [vmem:[%s333_s1] sm:$0xf]  ;;  %v216_v3 = vld [vmem:[%s336_s3 + $0x30] sm:$0xf]  ;;  %v231_v4 = vld [vmem:[%s336_s3 + $0x34] sm:$0xf0] }
   0x2   :  { %v37_v1 = vsel %vm35_vm0, %v26_v0, 0  ;;  %v25_v2 = vld [vmem:[%s334_s0] sm:$0xf]  ;;  %v230_v5 = vld [vmem:[%s336_s3 + $0x34] sm:$0xf]  ;;  %v217_v6 = vor.u32 %v231_v4, %v216_v3 }
   0x3   :  { %46 = vmatpush.bf16.msra.mxu0 %v37_v1  ;;  %v218_v7 = vld [vmem:[%s336_s3 + $0x38] sm:$0xf0]  ;;  %v208_v9 = vld [vmem:[%s336_s3 + $0x20] sm:$0xf]  ;;  %v229_v10 = vld [vmem:[%s336_s3 + $0x24] sm:$0xf0] }
   0x4   :  { %v221_v8 = vor.u32 %v230_v5, %v218_v7  ;;  %131 = vmatpush.bf16.msra.mxu1 %v217_v6  ;;  %v228_v11 = vld [vmem:[%s336_s3 + $0x24] sm:$0xf]  ;;  %v209_v12 = vor.u32 %v229_v10, %v208_v9  ;;  %v210_v13 = vld [vmem:[%s336_s3 + $0x28] sm:$0xf0]  ;;  %v232_v14 = vld [vmem:[%s335_s2] ss:$0 sm:$0xff] }
   0x5   :  { %v213_v15 = vor.u32 %v228_v11, %v210_v13  ;;  %v200_v16 = vld [vmem:[%s336_s3 + $0x10] sm:$0xf]  ;;  %v227_v17 = vld [vmem:[%s336_s3 + $0x14] sm:$0xf0]  ;;  %v226_v20 = vld [vmem:[%s336_s3 + $0x14] sm:$0xf] }
   0x6   :  { %188 = vmatmul.msk.bf16.vlgmr.msra.gmra.mxu0 %vm31_vm1, %v25_v2  ;;  %144 = vmatpush.bf16.msra.mxu2 %v221_v8  ;;  %v201_v19 = vor.u32 %v227_v17, %v200_v16  ;;  %v202_v21 = vld [vmem:[%s336_s3 + $0x18] sm:$0xf0]  ;;  %v192_v24 = vld [vmem:[%s336_s3] sm:$0xf]  ;;  %v225_v25 = vld [vmem:[%s336_s3 + $0x4] sm:$0xf0] }
   0x7   :  { %v205_v23 = vor.u32 %v226_v20, %v202_v21  ;;  %v224_v26 = vld [vmem:[%s336_s3 + $0x4] sm:$0xf]  ;;  %v193_v27 = vor.u32 %v225_v25, %v192_v24  ;;  %v194_v28 = vld [vmem:[%s336_s3 + $0x8] sm:$0xf0]  ;;  %v174_v46 = vld [vmem:[%s337_s4] sm:$0x3] }
   0x8   :  { %132 = vmatpush.bf16.msra.mxu1 %v209_v12  ;;  %v197_v30 = vor.u32 %v224_v26, %v194_v28  ;;  %v176_v47 = vperm.slane %v174_v46, 0  ;;  %v177_v50 = vperm.slane %v174_v46, 1 }
   0xa   :  { %145 = vmatpush.bf16.msra.mxu2 %v213_v15 }
   0xc   :  { %133 = vmatpush.bf16.msra.mxu1 %v201_v19 }
   0xe   :  { %146 = vmatpush.bf16.msra.mxu2 %v205_v23 }
  0x10   :  { %134 = vmatpush.bf16.msra.mxu1 %v193_v27 }
  0x12   :  { %147 = vmatpush.bf16.msra.mxu2 %v197_v30 }
  0x83   :  { %v48_v18 = vpop.f32.mrf.mxu0 }
  0x84   :  { %v49_v22 = vadd.f32 %v232_v14, %v48_v18 }
  0x86   :  { %v189_v29 = vmul.f32 -1.442695, %v49_v22 }
  0x88   :  { %233 = vpow2.f32 %v189_v29 }
  0x8b   :  { %v50_v31 = vpop.f32.mrf.mxu0 }
  0x8e   :  { %v234_v32 = vpop.eup %233 }
  0x8f   :  { %v55_v33 = vadd.f32 1.0, %v234_v32 }
  0x91   :  { %235 = vrcp.f32 %v55_v33  ;;  %v67_v37 = vand.u32 2147483648, %v55_v33  ;;  %v65_v39 = vand.u32 2147483647, %v55_v33  ;;  %vm61_vm3 = vweird.f32 %v55_v33 }
  0x93   :  { %v68_v41 = vor.u32 1.1754944e-38, %v67_v37  ;;  %vm66_vm5 = vcmp.eq.f32.partialorder %v65_v39, 8.507059e+37 }
  0x97   :  { %v236_v34 = vpop.eup %235 }
  0x98   :  { %v57_v35 = vmul.f32 %v236_v34, %v55_v33  ;;  %vm62_vm2 = vweird.f32 %v236_v34 }
  0x99   :  { %vm63_vm4 = vmor %vm61_vm3, %vm62_vm2 }
  0x9a   :  { %v58_v36 = vsub.f32 1.0, %v57_v35 }
  0x9c   :  { %v59_v38 = vmul.f32 %v236_v34, %v58_v36 }
  0x9e   :  { %v60_v40 = vadd.f32 %v236_v34, %v59_v38 }
  0xa0   :  { %v64_v42 = vsel %vm63_vm4, %v236_v34, %v60_v40 }
  0xa1   :  { %v69_v43 = vsel %vm66_vm5, %v68_v41, %v64_v42 }
  0xa2   :  { %v71_v44 = vpack.c.bf16 %v69_v43, %v69_v43 }
  0xa4   :  { %73 = vst.msk [vmem:[#allocation2] sm:$0xf] %vm72_vm6, %v71_v44 }
  0xab   :  { %v74_v45 = vld [vmem:[#allocation2] sm:$0xf] }
  0xac   :  { %222 = vmatmul.msk.bf16.vlgmr.msra.gmra.mxu1 %vm123_vm7, %v74_v45  ;;  %223 = vmatmul.msk.bf16.vlgmr.msra.gmra.mxu2 %vm123_vm7, %v74_v45 }
 0x129   :  { %v136_v48 = vpop.f32.mrf.mxu1 }
 0x12a   :  { %v180_v49 = vadd.f32 %v176_v47, %v136_v48 }
 0x12c   :  { %182 = vst [vmem:[%s338_s5] sm:$0xff] %v180_v49 }
 0x12f   :  { %v149_v51 = vpop.f32.mrf.mxu2 }
 0x130   :  { %v181_v52 = vadd.f32 %v177_v50, %v149_v51 }
 0x131   :  { %v138_v53 = vpop.f32.mrf.mxu1 }
 0x132   :  { %183 = vst [vmem:[%s338_s5 + $0x8] sm:$0xff] %v181_v52 }
 0x137   :  { %v151_v54 = vpop.f32.mrf.mxu2 }

</bundles_post_ra>
